<compile_context>
chip_gen: v7x
topology: tpu7x:2x2x1
jax: 0.10.0
libtpu: 0.0.40
codegen_flags: <defaults>
</compile_context>

<pallas_src>
import functools

import jax
import jax.numpy as jnp
from jax.experimental import pallas as pl
from jax.experimental.pallas import tpu as pltpu


# ----------------------------------------------------------------------------
# Kernel 1: module-faithful forward on precomputed scalar losses.
# ----------------------------------------------------------------------------
def _awl_kernel(loss_ref, p_ref, out_ref):
    # loss_ref, p_ref: (1, num) f32 in VMEM.  out_ref: (1, 1) f32 in SMEM.
    loss = loss_ref[...]
    p = p_ref[...]
    p2 = p * p
    inv_p2 = pl.reciprocal(p2)          # exact (approx=False) reciprocal on EUP
    terms = 0.5 * loss * inv_p2 + jnp.log(1.0 + p2)
    out_ref[0, 0] = jnp.sum(terms)      # scalar leaves via the SMEM path


def automatic_weighted_loss(losses, params):
    """sum_i( 0.5 / p_i^2 * loss_i + log(1 + p_i^2) ) -- matches PyTorch forward."""
    num = params.shape[0]
    losses2d = losses.reshape(1, num).astype(jnp.float32)
    params2d = params.reshape(1, num).astype(jnp.float32)
    out = pl.pallas_call(
        _awl_kernel,
        out_shape=jax.ShapeDtypeStruct((1, 1), jnp.float32),
        in_specs=[pl.BlockSpec(memory_space=pltpu.MemorySpace.VMEM),
                  pl.BlockSpec(memory_space=pltpu.MemorySpace.VMEM)],
        out_specs=pl.BlockSpec(memory_space=pltpu.MemorySpace.SMEM),
    )(losses2d, params2d)
    return out[0, 0]


# ----------------------------------------------------------------------------
# Kernel 2: fused streaming version -- loss_i = mean(resid_i**2) computed on the
# fly, AWL weighting applied as a free per-task epilogue.
# ----------------------------------------------------------------------------
def _awl_fused_kernel(params_ref, resid_ref, out_ref, acc_ref, *,
                      total_rows, inv_n, needs_mask):
    t = pl.program_id(0)                     # task index ("parallel")
    s = pl.program_id(1)                     # streamed chunk index ("arbitrary")
    tile_rows = resid_ref.shape[0]           # static

    @pl.when(s == 0)
    def _init():
        acc_ref[...] = jnp.zeros_like(acc_ref)

    # bf16 stays bf16 on the wire; cast right before squaring, accumulate in f32.
    r = resid_ref[...].astype(jnp.float32)   # (tile_rows, 128)
    sq = r * r
    if needs_mask:                           # static: only emitted for ragged S
        rows_left = total_rows - s * tile_rows
        row = jax.lax.broadcasted_iota(jnp.int32, sq.shape, 0)
        sq = jnp.where(row < rows_left, sq, 0.0)

    # Pure-VPU hot loop: whole-vreg adds into an (8, 128) accumulator; all XLU
    # (cross-sublane / cross-lane) reduction is deferred to the epilogue.
    acc_ref[...] += jnp.sum(sq.reshape(tile_rows // 8, 8, sq.shape[1]), axis=0)

    @pl.when(s == pl.num_programs(1) - 1)
    def _epilogue():
        p = params_ref[t]                                          # SMEM scalar
        lane_sums = jnp.sum(acc_ref[...], axis=0, keepdims=True)   # (1, 128)
        total = jnp.sum(lane_sums, axis=1, keepdims=True)          # (1, 1)
        mean_loss = jnp.broadcast_to(total, lane_sums.shape) * inv_n
        p2 = jnp.full(lane_sums.shape, p * p, dtype=jnp.float32)
        # Single lane-dense (1, 128) store per task.
        out_ref[...] = 0.5 * mean_loss * pl.reciprocal(p2) + jnp.log(1.0 + p2)


def automatic_weighted_loss_fused(residuals, params, *, tile_s=1024):
    """residuals: (num, S, 128) per-task residual tensors (any float dtype).
    Returns sum_i( 0.5/p_i^2 * mean(residuals[i]**2) + log(1 + p_i^2) )."""
    num, S, L = residuals.shape
    assert L == 128, "flatten per-task residuals to (num, S, 128)"

    # Clamp the requested tile to the input extent, keep it a multiple of 8
    # (sublane tiling).  Ragged last chunks are handled by in-kernel masking.
    rows8 = ((S + 7) // 8) * 8
    tile_s = max(8, min(((tile_s + 7) // 8) * 8, rows8))
    n_chunks = pl.cdiv(S, tile_s)
    needs_mask = (S % tile_s) != 0
    inv_n = 1.0 / float(S * L)               # true element count (exact mean)

    block_bytes = tile_s * L * residuals.dtype.itemsize
    cp_kwargs = dict(dimension_semantics=("parallel", "arbitrary"))
    # Default double-buffering is kept; only raise scoped VMEM for very large
    # tile sweeps (v5e default scoped limit is 16 MiB).
    if 2 * block_bytes > (12 << 20):
        cp_kwargs["vmem_limit_bytes"] = int(2 * block_bytes + (8 << 20))

    # TODO(synk): on v7x with num == 1 (or odd num), add a leading size-2
    # "parallel" axis that splits the chunk range per TensorCore (per-core
    # partial sum-of-squares merged in the wrapper) so both cores stream bytes.
    kernel = functools.partial(_awl_fused_kernel, total_rows=S, inv_n=inv_n,
                               needs_mask=needs_mask)
    out = pl.pallas_call(
        kernel,
        out_shape=jax.ShapeDtypeStruct((num, 1, L), jnp.float32),
        grid_spec=pltpu.PrefetchScalarGridSpec(
            num_scalar_prefetch=1,                         # params -> SMEM
            grid=(num, n_chunks),                          # reduction axis last
            in_specs=[pl.BlockSpec((pl.Squeezed(), tile_s, L),
                                   lambda t, s, params: (t, s, 0))],
            out_specs=pl.BlockSpec((pl.Squeezed(), 1, L),
                                   lambda t, s, params: (t, 0, 0)),
            scratch_shapes=[pltpu.VMEM((8, L), jnp.float32)],
        ),
        compiler_params=pltpu.CompilerParams(**cp_kwargs),
    )(params.reshape(num).astype(jnp.float32), residuals)
    per_task = out[:, 0, 0]                                # (num,) weighted terms
    return jnp.sum(per_task)                               # tiny; fuses in XLA


def _reference(losses, params):
    # Pure-JAX reference mirroring the PyTorch forward loop.
    loss_sum = 0.0
    for i in range(params.shape[0]):
        loss_sum = loss_sum + 0.5 / params[i] ** 2 * losses[i] + jnp.log(1 + params[i] ** 2)
    return loss_sum


if __name__ == "__main__":
    num = 4

    # Parameter init exactly as in the module's __init__: torch.ones(num).
    params = jnp.ones((num,), dtype=jnp.float32)

    key = jax.random.PRNGKey(0)
    k1, k2 = jax.random.split(key)

    # Per-task residuals: batch=2, channels=4, 16x16 spatial -> scalar MSE losses.
    resid = jax.random.normal(k1, (num, 2, 4, 16, 16), dtype=jnp.float32)
    resid_flat = resid.reshape(num, 16, 128)            # 2*4*16*16 = 2048 = 16*128
    losses = jnp.mean(resid_flat ** 2, axis=(1, 2))     # (num,) scalar losses

    ref = _reference(losses, params)

    # 1) Module-faithful kernel on precomputed scalar losses.
    out1 = jax.block_until_ready(automatic_weighted_loss(losses, params))
    assert jnp.allclose(out1, ref, rtol=1e-5, atol=1e-5), (out1, ref)

    # 2) Fused streaming kernel (f32, tile clamps to the full 16-row extent).
    out2 = jax.block_until_ready(automatic_weighted_loss_fused(resid_flat, params))
    assert jnp.allclose(out2, ref, rtol=1e-5, atol=1e-5), (out2, ref)

    # 3) Fused kernel, bf16 pass-through + ragged S (exercises in-kernel cast,
    #    cdiv grid and last-chunk row masking: S=36, tile_s=16 -> 3 chunks).
    resid_bf16 = jax.random.normal(k2, (num, 36, 128), jnp.float32).astype(jnp.bfloat16)
    losses_bf16 = jnp.mean(resid_bf16.astype(jnp.float32) ** 2, axis=(1, 2))
    ref_bf16 = _reference(losses_bf16, params)
    out3 = jax.block_until_ready(
        automatic_weighted_loss_fused(resid_bf16, params, tile_s=16))
    assert jnp.allclose(out3, ref_bf16, rtol=1e-5, atol=1e-5), (out3, ref_bf16)

    print("KERNEL_OK")
</pallas_src>

<mosaic_0001>
module attributes {stable_mosaic.version = 11 : i64} {
  func.func @_awl_kernel(%arg0: memref<1x4xf32, #tpu.memory_space<vmem>>, %arg1: memref<1x4xf32, #tpu.memory_space<vmem>>, %arg2: memref<1x1xf32, #tpu.memory_space<smem>>) attributes {dimension_semantics = [], scalar_prefetch = 0 : i64, scratch_operands = 0 : i64, tpu.core_type = #tpu.core_type<tc>} {
    %c0 = arith.constant 0 : index
    %c0_0 = arith.constant 0 : index
    %0 = vector.load %arg0[%c0, %c0_0] : memref<1x4xf32, #tpu.memory_space<vmem>>, vector<1x4xf32>
    %c0_1 = arith.constant 0 : index
    %c0_2 = arith.constant 0 : index
    %1 = vector.load %arg1[%c0_1, %c0_2] : memref<1x4xf32, #tpu.memory_space<vmem>>, vector<1x4xf32>
    %2 = arith.mulf %1, %1 : vector<1x4xf32>
    %3 = tpu.reciprocal %2 : vector<1x4xf32> -> vector<1x4xf32>
    %cst = arith.constant 5.000000e-01 : f32
    %4 = vector.broadcast %cst : f32 to vector<1x4xf32>
    %5 = arith.mulf %4, %0 : vector<1x4xf32>
    %6 = arith.mulf %5, %3 : vector<1x4xf32>
    %cst_3 = arith.constant 1.000000e+00 : f32
    %7 = vector.broadcast %cst_3 : f32 to vector<1x4xf32>
    %8 = arith.addf %7, %2 : vector<1x4xf32>
    %9 = math.log %8 : vector<1x4xf32>
    %10 = arith.addf %6, %9 : vector<1x4xf32>
    %11 = vector.shape_cast %10 : vector<1x4xf32> to vector<1x1x4xf32>
    %cst_4 = arith.constant dense<0.000000e+00> : vector<1xf32>
    %12 = vector.multi_reduction <add>, %11, %cst_4 [1, 2] : vector<1x1x4xf32> to vector<1xf32>
    %13 = vector.shape_cast %12 : vector<1xf32> to vector<1x1x1xf32>
    %14 = vector.extract %13[0, 0, 0] : f32 from vector<1x1x1xf32>
    %c0_5 = arith.constant 0 : index
    %c0_6 = arith.constant 0 : index
    %15 = memref.load %arg2[%c0_5, %c0_6] : memref<1x1xf32, #tpu.memory_space<smem>>
    memref.store %14, %arg2[%c0_5, %c0_6] : memref<1x1xf32, #tpu.memory_space<smem>>
    return
  }
}

</mosaic_0001>

<bundles_post_ra>
// kernel: tpu_custom_call.1
= control target key start
LH: loop header
LB: loop body
LE: loop exit
PB: predicated region body
PF: predicated region fallthrough
CT: control target
= control target key end

     0   :  { %7 = vsyncpa [#allocation3], 0  ;;  %s149_s0 = inlined_call_operand.hbm [shape: f32[1,4], index: 0, kind: input, shape index: {}]   ;;  %s150_s1 = inlined_call_operand.vmem [shape: f32[1,4], index: 1, kind: input, shape index: {}]   ;;  %s151_s2 = inlined_call_operand.hbm [shape: f32[1,1], index: 2, kind: output, shape index: {}]  }
   0x1   :  { %8 = vsyncpa [#allocation4], 0  ;;  %s105_s9 = smov [#allocation2]   ;;  %s69_s13 = scalar_lea.hbm %s149_s0, 16 }
   0x2   :  { %s15_s10 = sshll.u32 %s105_s9, 4  ;;  %p70_p0 = scmp.ne.s32.totalorder %s149_s0, %s69_s13  ;;  %s16_s10 = int_to_ptr.vmem [resolvable:$true] %s15_s10 }
   0x3   :  { %p73_p1 = scmp.lt.u32.totalorder %s69_s13, %s149_s0 }
   0x5   :  { %p75_p2 = pnand %p73_p1, %p70_p0 }
   0x7   :  { %78 = shalt.err (!%p75_p2)
}
   0x8   :  { %s79_s18 = scalar_lea.vmem %s16_s10, 16  ;;  %s83_s19 = scalar_lea.vmem %s16_s10, 32 }
   0x9   :  { %p80_p3 = scmp.ne.s32.totalorder %s16_s10, %s79_s18  ;;  %p84_p4 = scmp.lt.s32.totalorder %s16_s10, %s16_s10 }
   0xa   :  { %p85_p5 = scmp.lt.s32.totalorder %s83_s19, %s79_s18 }
   0xc   :  { %p86_p6 = por %p85_p5, %p84_p4 }
   0xe   :  { %p87_p7 = pnand %p86_p6, %p80_p3 }
  0x10   :  { %90 = shalt.err (!%p87_p7)
}
  0x11   :  { %18 = dma.hbm_to_vmem [thread:$0]  %s149_s0, 16, %s16_s10, [#allocation3]  }
  0x12   :  { %101 = dma.done.wait [#allocation3], 16  }
  0x13   :  { %102 = vsyncadd [#allocation3], 4294967280  ;;  %v25_v0 = vld [vmem:[%s150_s1] sm:$0x1]  ;;  %vm34_vm0 = vcmask 24576   ;;  %s91_s25 = scalar_lea.hbm %s151_s2, 16 }
  0x14   :  { %v26_v1 = vmul.f32 %v25_v0, %v25_v0  ;;  %v24_v3 = vld [vmem:[#allocation2] sm:$0x1]  ;;  %p92_p8 = scmp.ne.s32.totalorder %s151_s2, %s91_s25  ;;  %p95_p9 = scmp.lt.u32.totalorder %s91_s25, %s151_s2 }
  0x15   :  { %v28_v4 = vmul.f32 0.5, %v24_v3 }
  0x16   :  { %65 = vrcp.f32 %v26_v1  ;;  %v30_v2 = vadd.f32 1.0, %v26_v1  ;;  %p97_p10 = pnand %p95_p9, %p92_p8 }
  0x18   :  { %67 = vlog2.f32 %v30_v2 }
  0x20   :  { %v66_v5 = vpop.eup %65 }
  0x21   :  { %v29_v6 = vmul.f32 %v66_v5, %v28_v4 }
  0x22   :  { %v68_v7 = vpop.eup %67 }
  0x23   :  { %v32_v8 = vmul.f32 0.6931472, %v68_v7 }
  0x25   :  { %v33_v9 = vadd.f32 %v32_v8, %v29_v6 }
  0x27   :  { %v35_v10 = vsel %vm34_vm0, %v33_v9, 0.0 }
  0x28   :  { %36 = vadd.xlane.f32.xlu0 %v35_v10 }
  0xb5   :  { %v37_v11 = vpop.xlane.xlu0 %36 }
  0xb6   :  { %v38_v12 = vrot.slane %v37_v11, 4 }
  0xb8   :  { %v39_v13 = vadd.f32 %v38_v12, %v37_v11 }
  0xba   :  { %v40_v14 = vrot.slane %v39_v13, 2 }
  0xbc   :  { %v41_v15 = vadd.f32 %v40_v14, %v39_v13 }
  0xbe   :  { %v42_v16 = vrot.slane %v41_v15, 1 }
  0xc0   :  { %v43_v17 = vadd.f32 %v42_v16, %v41_v15 }
  0xc2   :  { %61 = vpush %v43_v17 }
  0xf3   :  { %s62_s0 = spop %61 }
  0xf4   :  { %46 = sst [smem:[#allocation5]] %s62_s0 }
  0xf5   :  { %100 = shalt.err (!%p97_p10)
}
  0xf6   :  { %s106_s30 = smov [#allocation5]  }
  0xf7   :  { %54 = dma.smem_to_hbm %s106_s30, 16, %s151_s2, [#allocation4]  }
  0xf8   :  { %103 = dma.done.wait [#allocation4], 16  }
  0xf9   :  { %104 = vsyncadd [#allocation4], 4294967280 }
  0xfa   :  { %58 = sfence }
  0xfb   :  { %59 = vsyncpa [#allocation3], 1 }
  0xfc   :  { %60 = vsyncpa [#allocation4], 1 }

</bundles_post_ra>
